<compile_context>
chip_gen: v7x
topology: tpu7x:2x2x1
jax: 0.10.0
libtpu: 0.0.40
codegen_flags: <defaults>
</compile_context>

<pallas_src>
import jax
import jax.numpy as jnp
import numpy as np
from jax import lax
from jax.experimental import pallas as pl
from jax.experimental.pallas import tpu as pltpu


def _make_kernel(L, C, Ch, H, W):
    HW = H * W
    O = W + 1                 # data offset inside the lane-padded flat buffer
    P = HW + 2 * O            # padded flat length

    def kernel(x_ref, w3_ref, w1_ref, o_ref, pad_ref, patch_ref):
        # Activation in channels-major, spatially flattened layout: (C, H*W).
        x = x_ref[0]                                        # (C, HW) f32

        # Zero the small lane-padded buffer once per grid step; only the
        # interior is rewritten each layer, the halo stays zero (ReLU(0)=0
        # matches the conv's SAME zero padding).
        pad_ref[...] = jnp.zeros((C, P), jnp.float32)

        # Horizontal-edge masks (the lane-padded buffer already handles the
        # top/bottom edges).  Hoisted out of the layer loop.
        p_idx = lax.broadcasted_iota(jnp.int32, (1, HW), 1)
        w_idx = p_idx % W
        mask_l = (w_idx >= 1).astype(jnp.float32)           # tap dx = -1
        mask_r = (w_idx <= W - 2).astype(jnp.float32)       # tap dx = +1

        for l in range(L):                                  # unrolled layers
            xr = jnp.maximum(x, 0.0)                        # ReLU (f32, VPU)
            pad_ref[:, O:O + HW] = xr                       # refresh interior

            # im2col: build the (9*C, HW) patch matrix, one contiguous lane
            # slice per tap, full-width aligned stores into the scratch.
            for t in range(9):
                dy, dx = t // 3 - 1, t % 3 - 1
                off = O + dy * W + dx                       # static, in [0, 2W+2]
                sh = pad_ref[:, off:off + HW]               # (C, HW)
                if dx == -1:
                    sh = sh * mask_l
                elif dx == 1:
                    sh = sh * mask_r
                patch_ref[t * C:(t + 1) * C, :] = sh

            # 3x3 conv == one (Ch, 9C) @ (9C, HW) matmul; bf16 in, f32 acc.
            h = jnp.dot(w3_ref[l], patch_ref[...].astype(jnp.bfloat16),
                        preferred_element_type=jnp.float32)     # (Ch, HW)
            h = jnp.maximum(h, 0.0)                             # ReLU (f32)

            # 1x1 conv == (C, Ch) @ (Ch, HW) matmul; bf16 in, f32 acc.
            y = jnp.dot(w1_ref[l], h.astype(jnp.bfloat16),
                        preferred_element_type=jnp.float32)     # (C, HW)

            x = x + y                                           # residual add

        o_ref[0] = jnp.maximum(x, 0.0)                          # final F.relu

    return kernel


def residual_stack_pallas(x_nchw, w3_torch, w1_torch):
    """x_nchw: (B, C, H, W) f32.
    w3_torch: (L, Ch, C, 3, 3)   (PyTorch OIHW, stacked over layers).
    w1_torch: (L, C, Ch, 1, 1)   (PyTorch OIHW, stacked over layers)."""
    B, C, H, W = x_nchw.shape
    L, Ch = w3_torch.shape[0], w3_torch.shape[1]
    HW = H * W
    P = HW + 2 * (W + 1)

    # Channels-major, spatially-flattened activations (free reshape of NCHW).
    x_flat = x_nchw.reshape(B, C, HW)

    # Pre-flatten weights in the wrapper (no 5-D slicing in the hot loop):
    #   (L, Ch, C, 3, 3) -> (L, Ch, 3, 3, C) -> (L, Ch, 9*C),  bf16
    w3mat = jnp.transpose(w3_torch, (0, 1, 3, 4, 2)).reshape(L, Ch, 9 * C)
    w3mat = w3mat.astype(jnp.bfloat16)
    #   (L, C, Ch, 1, 1) -> (L, C, Ch),  bf16
    w1mat = w1_torch.reshape(L, C, Ch).astype(jnp.bfloat16)

    kernel = _make_kernel(L, C, Ch, H, W)

    out_flat = pl.pallas_call(
        kernel,
        out_shape=jax.ShapeDtypeStruct((B, C, HW), jnp.float32),
        grid_spec=pltpu.PrefetchScalarGridSpec(
            num_scalar_prefetch=0,
            grid=(B,),
            in_specs=[
                pl.BlockSpec((1, C, HW), lambda b: (b, 0, 0)),       # lane-dense
                pl.BlockSpec((L, Ch, 9 * C), lambda b: (0, 0, 0)),   # full array
                pl.BlockSpec((L, C, Ch), lambda b: (0, 0, 0)),       # full array
            ],
            out_specs=pl.BlockSpec((1, C, HW), lambda b: (b, 0, 0)),
            scratch_shapes=[
                pltpu.VMEM((C, P), jnp.float32),        # lane-padded activation
                pltpu.VMEM((9 * C, HW), jnp.float32),   # im2col patch matrix
            ],
        ),
        compiler_params=pltpu.CompilerParams(
            dimension_semantics=("parallel",)),
    )(x_flat, w3mat, w1mat)

    return out_flat.reshape(B, C, H, W)


def residual_stack_reference(x_nchw, w3_torch, w1_torch):
    """Pure-JAX (f32) reference matching the PyTorch forward."""
    L = w3_torch.shape[0]
    x = x_nchw
    for l in range(L):
        h = jax.nn.relu(x)
        h = lax.conv_general_dilated(
            h, w3_torch[l], window_strides=(1, 1), padding="SAME",
            dimension_numbers=("NCHW", "OIHW", "NCHW"))
        h = jax.nn.relu(h)
        h = lax.conv_general_dilated(
            h, w1_torch[l], window_strides=(1, 1), padding="VALID",
            dimension_numbers=("NCHW", "OIHW", "NCHW"))
        x = x + h
    return jax.nn.relu(x)


if __name__ == "__main__":
    # Small shapes consistent with the module:
    #   in_channels = num_hiddens = 8, num_residual_hiddens = 16,
    #   num_residual_layers = 2, batch = 2, spatial = 16x16  (W*C = 128).
    B, C, H, W = 2, 8, 16, 16
    Ch = 16
    L = 2

    key = jax.random.PRNGKey(0)
    kx, kw3, kw1 = jax.random.split(key, 3)

    x_nchw = jax.random.normal(kx, (B, C, H, W), dtype=jnp.float32)
    w3_torch = 0.1 * jax.random.normal(kw3, (L, Ch, C, 3, 3), dtype=jnp.float32)
    w1_torch = 0.1 * jax.random.normal(kw1, (L, C, Ch, 1, 1), dtype=jnp.float32)

    out = jax.block_until_ready(residual_stack_pallas(x_nchw, w3_torch, w1_torch))
    ref = jax.block_until_ready(residual_stack_reference(x_nchw, w3_torch, w1_torch))

    assert out.shape == (B, C, H, W)
    # bf16 matmul operands (f32 accumulation) -> relaxed tolerance vs f32 ref.
    np.testing.assert_allclose(np.asarray(out), np.asarray(ref),
                               rtol=5e-2, atol=5e-2)
    print("KERNEL_OK")
</pallas_src>

<mosaic_0001>
module attributes {stable_mosaic.version = 11 : i64} {
  func.func @kernel(%arg0: i32, %arg1: memref<1x8x256xf32, #tpu.memory_space<vmem>>, %arg2: memref<2x16x72xbf16, #tpu.memory_space<vmem>>, %arg3: memref<2x8x16xbf16, #tpu.memory_space<vmem>>, %arg4: memref<1x8x256xf32, #tpu.memory_space<vmem>>, %arg5: memref<8x290xf32, #tpu.memory_space<vmem>>, %arg6: memref<72x256xf32, #tpu.memory_space<vmem>>) attributes {dimension_semantics = [#tpu.dimension_semantics<parallel>], iteration_bounds = array<i64: 2>, scalar_prefetch = 0 : i64, scratch_operands = 2 : i64, tpu.core_type = #tpu.core_type<tc>, window_params = [{transform_indices = @transform_0, window_bounds = array<i64: 1, 8, 256>}, {pipeline_mode = #tpu.pipeline_mode<synchronous>, transform_indices = @transform_1, window_bounds = array<i64: 2, 16, 72>}, {pipeline_mode = #tpu.pipeline_mode<synchronous>, transform_indices = @transform_2, window_bounds = array<i64: 2, 8, 16>}, {transform_indices = @transform_3, window_bounds = array<i64: 1, 8, 256>}]} {
    %c0 = arith.constant 0 : index
    %c0_0 = arith.constant 0 : index
    %c0_1 = arith.constant 0 : index
    %0 = vector.load %arg1[%c0, %c0_0, %c0_1] : memref<1x8x256xf32, #tpu.memory_space<vmem>>, vector<1x8x256xf32>
    %1 = vector.shape_cast %0 : vector<1x8x256xf32> to vector<8x256xf32>
    %cst = arith.constant 0.000000e+00 : f32
    %2 = vector.broadcast %cst : f32 to vector<8x290xf32>
    %c0_2 = arith.constant 0 : index
    %c0_3 = arith.constant 0 : index
    %3 = vector.load %arg5[%c0_2, %c0_3] : memref<8x290xf32, #tpu.memory_space<vmem>>, vector<8x290xf32>
    tpu.vector_store %arg5[%c0_2, %c0_3], %2 {strides = array<i32>} : memref<8x290xf32, #tpu.memory_space<vmem>>, vector<8x290xf32>,
    %4 = tpu.iota {dimensions = array<i32: 1>} : vector<1x256xi32>
    %c16_i32 = arith.constant 16 : i32
    %c0_i32 = arith.constant 0 : i32
    %5 = arith.cmpi eq, %c16_i32, %c0_i32 : i32
    %c1_i32 = arith.constant 1 : i32
    %6 = arith.select %5, %c1_i32, %c16_i32 : i32
    %7 = vector.broadcast %6 : i32 to vector<1x256xi32>
    %8 = arith.remsi %4, %7 : vector<1x256xi32>
    %c0_i32_4 = arith.constant 0 : i32
    %9 = vector.broadcast %c0_i32_4 : i32 to vector<1x256xi32>
    %10 = arith.cmpi ne, %8, %9 : vector<1x256xi32>
    %c0_i32_5 = arith.constant 0 : i32
    %11 = vector.broadcast %c0_i32_5 : i32 to vector<1x256xi32>
    %12 = arith.cmpi slt, %8, %11 : vector<1x256xi32>
    %c0_i32_6 = arith.constant 0 : i32
    %13 = arith.cmpi slt, %6, %c0_i32_6 : i32
    %14 = vector.broadcast %13 : i1 to vector<1x256xi1>
    %15 = vector.broadcast %14 : vector<1x256xi1> to vector<1x256xi1>
    %16 = arith.xori %12, %15 : vector<1x256xi1>
    %17 = arith.andi %16, %10 : vector<1x256xi1>
    %18 = vector.broadcast %6 : i32 to vector<1x256xi32>
    %19 = arith.addi %8, %18 : vector<1x256xi32>
    %20 = arith.select %17, %19, %8 : vector<1x256xi1>, vector<1x256xi32>
    %c1_i32_7 = arith.constant 1 : i32
    %21 = vector.broadcast %c1_i32_7 : i32 to vector<1x256xi32>
    %22 = arith.cmpi sge, %20, %21 : vector<1x256xi32>
    %23 = arith.extui %22 : vector<1x256xi1> to vector<1x256xi32>
    %24 = arith.sitofp %23 : vector<1x256xi32> to vector<1x256xf32>
    %c14_i32 = arith.constant 14 : i32
    %25 = vector.broadcast %c14_i32 : i32 to vector<1x256xi32>
    %26 = arith.cmpi sle, %20, %25 : vector<1x256xi32>
    %27 = arith.extui %26 : vector<1x256xi1> to vector<1x256xi32>
    %28 = arith.sitofp %27 : vector<1x256xi32> to vector<1x256xf32>
    %cst_8 = arith.constant 0.000000e+00 : f32
    %29 = vector.broadcast %cst_8 : f32 to vector<8x256xf32>
    %30 = arith.maximumf %1, %29 : vector<8x256xf32>
    %c0_9 = arith.constant 0 : index
    %c17 = arith.constant 17 : index
    %31 = vector.load %arg5[%c0_9, %c17] : memref<8x290xf32, #tpu.memory_space<vmem>>, vector<8x256xf32>
    tpu.vector_store %arg5[%c0_9, %c17], %30 {strides = array<i32>} : memref<8x290xf32, #tpu.memory_space<vmem>>, vector<8x256xf32>,
    %c0_10 = arith.constant 0 : index
    %c0_11 = arith.constant 0 : index
    %32 = vector.load %arg5[%c0_10, %c0_11] : memref<8x290xf32, #tpu.memory_space<vmem>>, vector<8x256xf32>
    %33 = vector.broadcast %24 : vector<1x256xf32> to vector<8x256xf32>
    %34 = arith.mulf %32, %33 : vector<8x256xf32>
    %c0_12 = arith.constant 0 : index
    %c0_13 = arith.constant 0 : index
    %35 = vector.load %arg6[%c0_12, %c0_13] : memref<72x256xf32, #tpu.memory_space<vmem>>, vector<8x256xf32>
    tpu.vector_store %arg6[%c0_12, %c0_13], %34 {strides = array<i32>} : memref<72x256xf32, #tpu.memory_space<vmem>>, vector<8x256xf32>,
    %c0_14 = arith.constant 0 : index
    %c1 = arith.constant 1 : index
    %36 = vector.load %arg5[%c0_14, %c1] : memref<8x290xf32, #tpu.memory_space<vmem>>, vector<8x256xf32>
    %c8 = arith.constant 8 : index
    %c0_15 = arith.constant 0 : index
    %37 = vector.load %arg6[%c8, %c0_15] : memref<72x256xf32, #tpu.memory_space<vmem>>, vector<8x256xf32>
    tpu.vector_store %arg6[%c8, %c0_15], %36 {strides = array<i32>} : memref<72x256xf32, #tpu.memory_space<vmem>>, vector<8x256xf32>,
    %c0_16 = arith.constant 0 : index
    %c2 = arith.constant 2 : index
    %38 = vector.load %arg5[%c0_16, %c2] : memref<8x290xf32, #tpu.memory_space<vmem>>, vector<8x256xf32>
    %39 = vector.broadcast %28 : vector<1x256xf32> to vector<8x256xf32>
    %40 = arith.mulf %38, %39 : vector<8x256xf32>
    %c16 = arith.constant 16 : index
    %c0_17 = arith.constant 0 : index
    %41 = vector.load %arg6[%c16, %c0_17] : memref<72x256xf32, #tpu.memory_space<vmem>>, vector<8x256xf32>
    tpu.vector_store %arg6[%c16, %c0_17], %40 {strides = array<i32>} : memref<72x256xf32, #tpu.memory_space<vmem>>, vector<8x256xf32>,
    %c0_18 = arith.constant 0 : index
    %c16_19 = arith.constant 16 : index
    %42 = vector.load %arg5[%c0_18, %c16_19] : memref<8x290xf32, #tpu.memory_space<vmem>>, vector<8x256xf32>
    %43 = vector.broadcast %24 : vector<1x256xf32> to vector<8x256xf32>
    %44 = arith.mulf %42, %43 : vector<8x256xf32>
    %c24 = arith.constant 24 : index
    %c0_20 = arith.constant 0 : index
    %45 = vector.load %arg6[%c24, %c0_20] : memref<72x256xf32, #tpu.memory_space<vmem>>, vector<8x256xf32>
    tpu.vector_store %arg6[%c24, %c0_20], %44 {strides = array<i32>} : memref<72x256xf32, #tpu.memory_space<vmem>>, vector<8x256xf32>,
    %c0_21 = arith.constant 0 : index
    %c17_22 = arith.constant 17 : index
    %46 = vector.load %arg5[%c0_21, %c17_22] : memref<8x290xf32, #tpu.memory_space<vmem>>, vector<8x256xf32>
    %c32 = arith.constant 32 : index
    %c0_23 = arith.constant 0 : index
    %47 = vector.load %arg6[%c32, %c0_23] : memref<72x256xf32, #tpu.memory_space<vmem>>, vector<8x256xf32>
    tpu.vector_store %arg6[%c32, %c0_23], %46 {strides = array<i32>} : memref<72x256xf32, #tpu.memory_space<vmem>>, vector<8x256xf32>,
    %c0_24 = arith.constant 0 : index
    %c18 = arith.constant 18 : index
    %48 = vector.load %arg5[%c0_24, %c18] : memref<8x290xf32, #tpu.memory_space<vmem>>, vector<8x256xf32>
    %49 = vector.broadcast %28 : vector<1x256xf32> to vector<8x256xf32>
    %50 = arith.mulf %48, %49 : vector<8x256xf32>
    %c40 = arith.constant 40 : index
    %c0_25 = arith.constant 0 : index
    %51 = vector.load %arg6[%c40, %c0_25] : memref<72x256xf32, #tpu.memory_space<vmem>>, vector<8x256xf32>
    tpu.vector_store %arg6[%c40, %c0_25], %50 {strides = array<i32>} : memref<72x256xf32, #tpu.memory_space<vmem>>, vector<8x256xf32>,
    %c0_26 = arith.constant 0 : index
    %c32_27 = arith.constant 32 : index
    %52 = vector.load %arg5[%c0_26, %c32_27] : memref<8x290xf32, #tpu.memory_space<vmem>>, vector<8x256xf32>
    %53 = vector.broadcast %24 : vector<1x256xf32> to vector<8x256xf32>
    %54 = arith.mulf %52, %53 : vector<8x256xf32>
    %c48 = arith.constant 48 : index
    %c0_28 = arith.constant 0 : index
    %55 = vector.load %arg6[%c48, %c0_28] : memref<72x256xf32, #tpu.memory_space<vmem>>, vector<8x256xf32>
    tpu.vector_store %arg6[%c48, %c0_28], %54 {strides = array<i32>} : memref<72x256xf32, #tpu.memory_space<vmem>>, vector<8x256xf32>,
    %c0_29 = arith.constant 0 : index
    %c33 = arith.constant 33 : index
    %56 = vector.load %arg5[%c0_29, %c33] : memref<8x290xf32, #tpu.memory_space<vmem>>, vector<8x256xf32>
    %c56 = arith.constant 56 : index
    %c0_30 = arith.constant 0 : index
    %57 = vector.load %arg6[%c56, %c0_30] : memref<72x256xf32, #tpu.memory_space<vmem>>, vector<8x256xf32>
    tpu.vector_store %arg6[%c56, %c0_30], %56 {strides = array<i32>} : memref<72x256xf32, #tpu.memory_space<vmem>>, vector<8x256xf32>,
    %c0_31 = arith.constant 0 : index
    %c34 = arith.constant 34 : index
    %58 = vector.load %arg5[%c0_31, %c34] : memref<8x290xf32, #tpu.memory_space<vmem>>, vector<8x256xf32>
    %59 = vector.broadcast %28 : vector<1x256xf32> to vector<8x256xf32>
    %60 = arith.mulf %58, %59 : vector<8x256xf32>
    %c64 = arith.constant 64 : index
    %c0_32 = arith.constant 0 : index
    %61 = vector.load %arg6[%c64, %c0_32] : memref<72x256xf32, #tpu.memory_space<vmem>>, vector<8x256xf32>
    tpu.vector_store %arg6[%c64, %c0_32], %60 {strides = array<i32>} : memref<72x256xf32, #tpu.memory_space<vmem>>, vector<8x256xf32>,
    %c0_33 = arith.constant 0 : index
    %c0_34 = arith.constant 0 : index
    %c0_35 = arith.constant 0 : index
    %62 = vector.load %arg2[%c0_33, %c0_34, %c0_35] : memref<2x16x72xbf16, #tpu.memory_space<vmem>>, vector<1x16x72xbf16>
    %63 = vector.shape_cast %62 : vector<1x16x72xbf16> to vector<16x72xbf16>
    %c0_36 = arith.constant 0 : index
    %c0_37 = arith.constant 0 : index
    %64 = vector.load %arg6[%c0_36, %c0_37] : memref<72x256xf32, #tpu.memory_space<vmem>>, vector<72x256xf32>
    %65 = arith.truncf %64 : vector<72x256xf32> to vector<72x256xbf16>
    %cst_38 = arith.constant dense<0.000000e+00> : vector<16x256xf32>
    %66 = tpu.matmul %63, %65, %cst_38 {dimension_numbers = #tpu.dot_dimension_numbers<[1], [0], [0], [1], [0, 0, 1, 1], [], []>} : vector<16x72xbf16>, vector<72x256xbf16>, vector<16x256xf32> -> vector<16x256xf32>
    %cst_39 = arith.constant 0.000000e+00 : f32
    %67 = vector.broadcast %cst_39 : f32 to vector<16x256xf32>
    %68 = arith.maximumf %66, %67 : vector<16x256xf32>
    %c0_40 = arith.constant 0 : index
    %c0_41 = arith.constant 0 : index
    %c0_42 = arith.constant 0 : index
    %69 = vector.load %arg3[%c0_40, %c0_41, %c0_42] : memref<2x8x16xbf16, #tpu.memory_space<vmem>>, vector<1x8x16xbf16>
    %70 = vector.shape_cast %69 : vector<1x8x16xbf16> to vector<8x16xbf16>
    %71 = arith.truncf %68 : vector<16x256xf32> to vector<16x256xbf16>
    %cst_43 = arith.constant dense<0.000000e+00> : vector<8x256xf32>
    %72 = tpu.matmul %70, %71, %cst_43 {dimension_numbers = #tpu.dot_dimension_numbers<[1], [0], [0], [1], [0, 0, 1, 1], [], []>} : vector<8x16xbf16>, vector<16x256xbf16>, vector<8x256xf32> -> vector<8x256xf32>
    %73 = arith.addf %1, %72 : vector<8x256xf32>
    %cst_44 = arith.constant 0.000000e+00 : f32
    %74 = vector.broadcast %cst_44 : f32 to vector<8x256xf32>
    %75 = arith.maximumf %73, %74 : vector<8x256xf32>
    %c0_45 = arith.constant 0 : index
    %c17_46 = arith.constant 17 : index
    %76 = vector.load %arg5[%c0_45, %c17_46] : memref<8x290xf32, #tpu.memory_space<vmem>>, vector<8x256xf32>
    tpu.vector_store %arg5[%c0_45, %c17_46], %75 {strides = array<i32>} : memref<8x290xf32, #tpu.memory_space<vmem>>, vector<8x256xf32>,
    %c0_47 = arith.constant 0 : index
    %c0_48 = arith.constant 0 : index
    %77 = vector.load %arg5[%c0_47, %c0_48] : memref<8x290xf32, #tpu.memory_space<vmem>>, vector<8x256xf32>
    %78 = vector.broadcast %24 : vector<1x256xf32> to vector<8x256xf32>
    %79 = arith.mulf %77, %78 : vector<8x256xf32>
    %c0_49 = arith.constant 0 : index
    %c0_50 = arith.constant 0 : index
    %80 = vector.load %arg6[%c0_49, %c0_50] : memref<72x256xf32, #tpu.memory_space<vmem>>, vector<8x256xf32>
    tpu.vector_store %arg6[%c0_49, %c0_50], %79 {strides = array<i32>} : memref<72x256xf32, #tpu.memory_space<vmem>>, vector<8x256xf32>,
    %c0_51 = arith.constant 0 : index
    %c1_52 = arith.constant 1 : index
    %81 = vector.load %arg5[%c0_51, %c1_52] : memref<8x290xf32, #tpu.memory_space<vmem>>, vector<8x256xf32>
    %c8_53 = arith.constant 8 : index
    %c0_54 = arith.constant 0 : index
    %82 = vector.load %arg6[%c8_53, %c0_54] : memref<72x256xf32, #tpu.memory_space<vmem>>, vector<8x256xf32>
    tpu.vector_store %arg6[%c8_53, %c0_54], %81 {strides = array<i32>} : memref<72x256xf32, #tpu.memory_space<vmem>>, vector<8x256xf32>,
    %c0_55 = arith.constant 0 : index
    %c2_56 = arith.constant 2 : index
    %83 = vector.load %arg5[%c0_55, %c2_56] : memref<8x290xf32, #tpu.memory_space<vmem>>, vector<8x256xf32>
    %84 = vector.broadcast %28 : vector<1x256xf32> to vector<8x256xf32>
    %85 = arith.mulf %83, %84 : vector<8x256xf32>
    %c16_57 = arith.constant 16 : index
    %c0_58 = arith.constant 0 : index
    %86 = vector.load %arg6[%c16_57, %c0_58] : memref<72x256xf32, #tpu.memory_space<vmem>>, vector<8x256xf32>
    tpu.vector_store %arg6[%c16_57, %c0_58], %85 {strides = array<i32>} : memref<72x256xf32, #tpu.memory_space<vmem>>, vector<8x256xf32>,
    %c0_59 = arith.constant 0 : index
    %c16_60 = arith.constant 16 : index
    %87 = vector.load %arg5[%c0_59, %c16_60] : memref<8x290xf32, #tpu.memory_space<vmem>>, vector<8x256xf32>
    %88 = vector.broadcast %24 : vector<1x256xf32> to vector<8x256xf32>
    %89 = arith.mulf %87, %88 : vector<8x256xf32>
    %c24_61 = arith.constant 24 : index
    %c0_62 = arith.constant 0 : index
    %90 = vector.load %arg6[%c24_61, %c0_62] : memref<72x256xf32, #tpu.memory_space<vmem>>, vector<8x256xf32>
    tpu.vector_store %arg6[%c24_61, %c0_62], %89 {strides = array<i32>} : memref<72x256xf32, #tpu.memory_space<vmem>>, vector<8x256xf32>,
    %c0_63 = arith.constant 0 : index
    %c17_64 = arith.constant 17 : index
    %91 = vector.load %arg5[%c0_63, %c17_64] : memref<8x290xf32, #tpu.memory_space<vmem>>, vector<8x256xf32>
    %c32_65 = arith.constant 32 : index
    %c0_66 = arith.constant 0 : index
    %92 = vector.load %arg6[%c32_65, %c0_66] : memref<72x256xf32, #tpu.memory_space<vmem>>, vector<8x256xf32>
    tpu.vector_store %arg6[%c32_65, %c0_66], %91 {strides = array<i32>} : memref<72x256xf32, #tpu.memory_space<vmem>>, vector<8x256xf32>,
    %c0_67 = arith.constant 0 : index
    %c18_68 = arith.constant 18 : index
    %93 = vector.load %arg5[%c0_67, %c18_68] : memref<8x290xf32, #tpu.memory_space<vmem>>, vector<8x256xf32>
    %94 = vector.broadcast %28 : vector<1x256xf32> to vector<8x256xf32>
    %95 = arith.mulf %93, %94 : vector<8x256xf32>
    %c40_69 = arith.constant 40 : index
    %c0_70 = arith.constant 0 : index
    %96 = vector.load %arg6[%c40_69, %c0_70] : memref<72x256xf32, #tpu.memory_space<vmem>>, vector<8x256xf32>
    tpu.vector_store %arg6[%c40_69, %c0_70], %95 {strides = array<i32>} : memref<72x256xf32, #tpu.memory_space<vmem>>, vector<8x256xf32>,
    %c0_71 = arith.constant 0 : index
    %c32_72 = arith.constant 32 : index
    %97 = vector.load %arg5[%c0_71, %c32_72] : memref<8x290xf32, #tpu.memory_space<vmem>>, vector<8x256xf32>
    %98 = vector.broadcast %24 : vector<1x256xf32> to vector<8x256xf32>
    %99 = arith.mulf %97, %98 : vector<8x256xf32>
    %c48_73 = arith.constant 48 : index
    %c0_74 = arith.constant 0 : index
    %100 = vector.load %arg6[%c48_73, %c0_74] : memref<72x256xf32, #tpu.memory_space<vmem>>, vector<8x256xf32>
    tpu.vector_store %arg6[%c48_73, %c0_74], %99 {strides = array<i32>} : memref<72x256xf32, #tpu.memory_space<vmem>>, vector<8x256xf32>,
    %c0_75 = arith.constant 0 : index
    %c33_76 = arith.constant 33 : index
    %101 = vector.load %arg5[%c0_75, %c33_76] : memref<8x290xf32, #tpu.memory_space<vmem>>, vector<8x256xf32>
    %c56_77 = arith.constant 56 : index
    %c0_78 = arith.constant 0 : index
    %102 = vector.load %arg6[%c56_77, %c0_78] : memref<72x256xf32, #tpu.memory_space<vmem>>, vector<8x256xf32>
    tpu.vector_store %arg6[%c56_77, %c0_78], %101 {strides = array<i32>} : memref<72x256xf32, #tpu.memory_space<vmem>>, vector<8x256xf32>,
    %c0_79 = arith.constant 0 : index
    %c34_80 = arith.constant 34 : index
    %103 = vector.load %arg5[%c0_79, %c34_80] : memref<8x290xf32, #tpu.memory_space<vmem>>, vector<8x256xf32>
    %104 = vector.broadcast %28 : vector<1x256xf32> to vector<8x256xf32>
    %105 = arith.mulf %103, %104 : vector<8x256xf32>
    %c64_81 = arith.constant 64 : index
    %c0_82 = arith.constant 0 : index
    %106 = vector.load %arg6[%c64_81, %c0_82] : memref<72x256xf32, #tpu.memory_space<vmem>>, vector<8x256xf32>
    tpu.vector_store %arg6[%c64_81, %c0_82], %105 {strides = array<i32>} : memref<72x256xf32, #tpu.memory_space<vmem>>, vector<8x256xf32>,
    %c1_83 = arith.constant 1 : index
    %c0_84 = arith.constant 0 : index
    %c0_85 = arith.constant 0 : index
    %107 = vector.load %arg2[%c1_83, %c0_84, %c0_85] : memref<2x16x72xbf16, #tpu.memory_space<vmem>>, vector<1x16x72xbf16>
    %108 = vector.shape_cast %107 : vector<1x16x72xbf16> to vector<16x72xbf16>
    %c0_86 = arith.constant 0 : index
    %c0_87 = arith.constant 0 : index
    %109 = vector.load %arg6[%c0_86, %c0_87] : memref<72x256xf32, #tpu.memory_space<vmem>>, vector<72x256xf32>
    %110 = arith.truncf %109 : vector<72x256xf32> to vector<72x256xbf16>
    %cst_88 = arith.constant dense<0.000000e+00> : vector<16x256xf32>
    %111 = tpu.matmul %108, %110, %cst_88 {dimension_numbers = #tpu.dot_dimension_numbers<[1], [0], [0], [1], [0, 0, 1, 1], [], []>} : vector<16x72xbf16>, vector<72x256xbf16>, vector<16x256xf32> -> vector<16x256xf32>
    %cst_89 = arith.constant 0.000000e+00 : f32
    %112 = vector.broadcast %cst_89 : f32 to vector<16x256xf32>
    %113 = arith.maximumf %111, %112 : vector<16x256xf32>
    %c1_90 = arith.constant 1 : index
    %c0_91 = arith.constant 0 : index
    %c0_92 = arith.constant 0 : index
    %114 = vector.load %arg3[%c1_90, %c0_91, %c0_92] : memref<2x8x16xbf16, #tpu.memory_space<vmem>>, vector<1x8x16xbf16>
    %115 = vector.shape_cast %114 : vector<1x8x16xbf16> to vector<8x16xbf16>
    %116 = arith.truncf %113 : vector<16x256xf32> to vector<16x256xbf16>
    %cst_93 = arith.constant dense<0.000000e+00> : vector<8x256xf32>
    %117 = tpu.matmul %115, %116, %cst_93 {dimension_numbers = #tpu.dot_dimension_numbers<[1], [0], [0], [1], [0, 0, 1, 1], [], []>} : vector<8x16xbf16>, vector<16x256xbf16>, vector<8x256xf32> -> vector<8x256xf32>
    %118 = arith.addf %73, %117 : vector<8x256xf32>
    %cst_94 = arith.constant 0.000000e+00 : f32
    %119 = vector.broadcast %cst_94 : f32 to vector<8x256xf32>
    %120 = arith.maximumf %118, %119 : vector<8x256xf32>
    %c0_95 = arith.constant 0 : index
    %c0_96 = arith.constant 0 : index
    %c0_97 = arith.constant 0 : index
    %121 = vector.load %arg4[%c0_95, %c0_96, %c0_97] : memref<1x8x256xf32, #tpu.memory_space<vmem>>, vector<1x8x256xf32>
    %122 = vector.shape_cast %121 : vector<1x8x256xf32> to vector<8x256xf32>
    %123 = vector.shape_cast %120 : vector<8x256xf32> to vector<1x8x256xf32>
    tpu.vector_store %arg4[%c0_95, %c0_96, %c0_97], %123 {strides = array<i32>} : memref<1x8x256xf32, #tpu.memory_space<vmem>>, vector<1x8x256xf32>,
    return
  }
  func.func @transform_0(%arg0: i32) -> (i32, i32, i32) {
    %c0_i32 = arith.constant 0 : i32
    %c0_i32_0 = arith.constant 0 : i32
    %c0_i32_1 = arith.constant 0 : i32
    return %arg0, %c0_i32, %c0_i32_0 : i32, i32, i32
  }
  func.func @transform_1(%arg0: i32) -> (i32, i32, i32) {
    %c0_i32 = arith.constant 0 : i32
    %c0_i32_0 = arith.constant 0 : i32
    %c0_i32_1 = arith.constant 0 : i32
    %c0_i32_2 = arith.constant 0 : i32
    return %c0_i32, %c0_i32_0, %c0_i32_1 : i32, i32, i32
  }
  func.func @transform_2(%arg0: i32) -> (i32, i32, i32) {
    %c0_i32 = arith.constant 0 : i32
    %c0_i32_0 = arith.constant 0 : i32
    %c0_i32_1 = arith.constant 0 : i32
    %c0_i32_2 = arith.constant 0 : i32
    return %c0_i32, %c0_i32_0, %c0_i32_1 : i32, i32, i32
  }
  func.func @transform_3(%arg0: i32) -> (i32, i32, i32) {
    %c0_i32 = arith.constant 0 : i32
    %c0_i32_0 = arith.constant 0 : i32
    %c0_i32_1 = arith.constant 0 : i32
    return %arg0, %c0_i32, %c0_i32_0 : i32, i32, i32
  }
}

</mosaic_0001>

<bundles_post_ra>
// kernel: tpu_custom_call.1
= control target key start
LH: loop header
LB: loop body
LE: loop exit
PB: predicated region body
PF: predicated region fallthrough
CT: control target
= control target key end

     0   :  { %8 = vsyncpa [#allocation5], 0  ;;  %s1942_s0 = inlined_call_operand.hbm [shape: f32[2,8,256], index: 0, kind: input, shape index: {}]   ;;  %s1943_s1 = inlined_call_operand.hbm [shape: bf16[2,16,72], index: 1, kind: input, shape index: {}]   ;;  %s1944_s2 = inlined_call_operand.hbm [shape: bf16[2,8,16], index: 2, kind: input, shape index: {}]   ;;  %s1945_s3 = inlined_call_operand.hbm [shape: f32[2,8,256], index: 3, kind: output, shape index: {}]  }
   0x1   :  { %10 = vsyncpa [#allocation5 + $0x1], 0 }
   0x2   :  { %11 = vsyncpa [#allocation8], 0 }
   0x3   :  { %12 = vsyncpa [#allocation6], 0 }
   0x4   :  { %14 = vsyncpa [#allocation6 + $0x1], 0  ;;  %s1496_s12 = smov 0   ;;  %s1498_s13 = smov 0  }
   0x5   :  { %s1500_s14 = smov 0   ;;  %s1502_s15 = smov 0  }
   0x6 LB: > { %s1517_s16 = sadd.s32 4294967295, %s1452_s15   ;;  %s1072_s17 = sadd.s32 4294967294, %s1452_s15   ;;  %s1452_s15 = sphi %s1502_s15, %s1965_s15   ;;  %s1448_s14 = sphi %s1500_s14, %s1964_s14   ;;  %s1444_s13 = sphi %s1498_s13, %s1963_s13   ;;  %s1440_s12 = sphi %s1496_s12, %s1962_s12  }
   0x7   : > { %p40_p0 = scmp.ne.s32.totalorder %s1444_s13, %s1440_s12  ;;  %p1946_p1 = scmp.eq.s32.totalorder %s1517_s16, 0 }
   0x8   : > { %p112_p3 = scmp.eq.s32.totalorder %s1072_s17, 1  ;;  %p1073_p5 = scmp.ge.s32.totalorder %s1452_s15, 1 }
   0x9   : > { %p1526_p4 = por %p1946_p1, %p40_p0  ;;  %p119_p7 = scmp.lt.s32.totalorder %s1452_s15, 3 }
   0xa   : > { %p1531_p6 = por %p112_p3, %p40_p0  ;;  %s1454_s21 = smov [#allocation7]  }
   0xb   : > { %s1949_s18 = scalar_select %p1526_p4, 1, 0 }
   0xc   : > { %s1950_s19 = scalar_select %p1531_p6, 1, 0 }
   0xd   : > { %p1536_p8 = pnand %p1073_p5, %p119_p7  ;;  %s131_s22 = sshll.u32 %s1454_s21, 4  ;;  %s1540_s22 = int_to_ptr.vmem [resolvable:$true] %s131_s22 }
   0xe   : > { %s1455_s24 = smov [#allocation9]   ;;  %s1296_s28 = scalar_lea.hbm %s1943_s1, 256 }
   0xf   : > { %p1116_p9 = pneg %p1536_p8  ;;  %s144_s25 = sshll.u32 %s1455_s24, 4  ;;  %s1551_s25 = int_to_ptr.vmem [resolvable:$true] %s144_s25 }
  0x10   : > { %p1297_p12 = scmp.ne.s32.totalorder %s1943_s1, %s1296_s28  ;;  %p1303_p5 = scmp.lt.u32.totalorder %s1296_s28, %s1943_s1 }
  0x11   : > { %p1547_p11 = pnand %p1116_p9, %p1946_p1 }
  0x13   : > { %p1298_p13 = pneg %p1547_p11 }
  0x15   : > { %p1299_p0 = pnand %p1298_p13, %p1297_p12 }
  0x17   : > { %p1300_p3 = pneg %p1299_p0 }
  0x19   : > { %p1305_p7 = pnand %p1303_p5, %p1300_p3 }
  0x1b   : > { %1308 = shalt.err (!%p1305_p7)
}
  0x1c   : > { %s1309_s6 = scalar_lea.vmem %s1540_s22, 256  ;;  %p1317_p2 = scmp.lt.s32.totalorder %s1540_s22, %s1540_s22 }
  0x1d   : > { %p1310_p9 = scmp.ne.s32.totalorder %s1540_s22, %s1309_s6  ;;  %p1318_p12 = scmp.lt.s32.totalorder %s1309_s6, %s1309_s6 }
  0x1f   : > { %p1312_p10 = pnand %p1310_p9, %p1298_p13  ;;  %p1319_p0 = por %p1318_p12, %p1317_p2 }
  0x21   : > { %p1313_p1 = pneg %p1312_p10 }
  0x23   : > { %p1320_p6 = pnand %p1319_p0, %p1313_p1 }
  0x25   : > { %1323 = shalt.err (!%p1320_p6)
}
  0x26   : > { %s1456_s7 = smov 64   ;;  %s1457_s8 = smov 4  }
  0x27   : > { %1119 = dma.hbm_to_vmem [thread:$0]  (!%p1547_p11), %s1943_s1, 256, %s1540_s22, [#allocation8], %s1456_s7, %s1456_s7, %s1457_s8  }
  0x28   : > { %s1324_s21 = scalar_lea.hbm %s1944_s2, 128 }
  0x29   : > { %p1325_p2 = scmp.ne.s32.totalorder %s1944_s2, %s1324_s21  ;;  %p1331_p10 = scmp.lt.u32.totalorder %s1324_s21, %s1944_s2 }
  0x2b   : > { %p1327_p1 = pnand %p1325_p2, %p1298_p13 }
  0x2d   : > { %p1328_p6 = pneg %p1327_p1 }
  0x2f   : > { %p1333_p3 = pnand %p1331_p10, %p1328_p6 }
  0x31   : > { %1336 = shalt.err (!%p1333_p3)
}
  0x32   : > { %s1337_s22 = scalar_lea.vmem %s1551_s25, 128  ;;  %p1345_p12 = scmp.lt.s32.totalorder %s1551_s25, %s1551_s25 }
  0x33   : > { %p1338_p5 = scmp.ne.s32.totalorder %s1551_s25, %s1337_s22  ;;  %p1346_p0 = scmp.lt.s32.totalorder %s1337_s22, %s1337_s22 }
  0x35   : > { %p1340_p7 = pnand %p1338_p5, %p1298_p13  ;;  %p1347_p2 = por %p1346_p0, %p1345_p12 }
  0x37   : > { %p1341_p9 = pneg %p1340_p7 }
  0x39   : > { %p1348_p1 = pnand %p1347_p2, %p1341_p9 }
  0x3b   : > { %1351 = shalt.err (!%p1348_p1)
}
  0x3c   : > { %1122 = dma.hbm_to_vmem [thread:$0]  (!%p1547_p11), %s1944_s2, 128, %s1551_s25, [#allocation8], %s1456_s7, %s1456_s7, %s1457_s8  }
  0x3d   : > { %s1606_s4 = sadd.s32 1, %s1452_s15   ;;  %s27_s23 = sadd.s32 1, %s1448_s14 }
  0x3e   : > { %s24_s5 = ssub.s32 %s1452_s15, %s1606_s4  ;;  %p34_p13 = scmp.ne.s32.totalorder %s1448_s14, %s1444_s13 }
  0x3f   : > { %p25_p6 = scmp.eq.s32.totalorder %s24_s5, 0  ;;  %p35_p10 = scmp.eq.s32.totalorder %s1452_s15, 0 }
  0x40   : > { %p1953_p3 = scmp.eq.s32.totalorder %s1517_s16, 1  ;;  %p1133_p7 = scmp.lt.s32.totalorder %s1452_s15, 2 }
  0x41   : > { %s1622_s9 = scalar_select %p25_p6, %s1448_s14, %s27_s23  }
  0x42   : > { %p1616_p5 = por %p1953_p3, %p34_p13  ;;  %p36_p9 = por %p35_p10, %p34_p13 }
  0x43   : > { %s158_s10 = sand.u32 1, %s1448_s14   ;;  %s1102_s25 = sshll.u32 %s1452_s15, 8 }
  0x44   : > { %s1954_s6 = scalar_select %p1616_p5, 1, 0 }
  0x45   : > { %s1077_s11 = sshll.u32 %s158_s10, 4  ;;  %s1629_s17 = scalar_lea.hbm %s1942_s0, %s1102_s25 }
  0x46   : > { %s162_s21 = scalar_lea.vmem [#allocation4], %s1077_s11  ;;  %p1633_p11 = pnand %p1133_p7, %p36_p9 }
  0x47   : > { %s170_s24 = sshll.u32 %s162_s21, 4  ;;  %s159_s27 = scalar_lea.sflag [#allocation5], %s158_s10  ;;  %s1631_s24 = int_to_ptr.vmem [resolvable:$true] %s170_s24 }
  0x48   : > { %s1352_s28 = scalar_lea.hbm %s1629_s17, 256  ;;  %p1354_p0 = pneg %p1633_p11 }
  0x49   : > { %p1353_p12 = scmp.ne.s32.totalorder %s1629_s17, %s1352_s28  ;;  %s1357_s30 = scalar_lea.hbm %s1942_s0, 512 }
  0x4a   : > { %p1358_p13 = scmp.lt.u32.totalorder %s1629_s17, %s1942_s0  ;;  %p1359_p6 = scmp.lt.u32.totalorder %s1357_s30, %s1352_s28 }
  0x4b   : > { %p1355_p2 = pnand %p1354_p0, %p1353_p12  ;;  %p1361_p3 = scmp.lt.u32.totalorder %s1352_s28, %s1629_s17 }
  0x4c   : > { %p1360_p10 = por %p1359_p6, %p1358_p13 }
  0x4d   : > { %p1356_p1 = pneg %p1355_p2 }
  0x4e   : > { %p1362_p7 = por %p1361_p3, %p1360_p10 }
  0x50   : > { %p1363_p9 = pnand %p1362_p7, %p1356_p1 }
  0x52   : > { %1366 = shalt.err (!%p1363_p9)
}
  0x53   : > { %s1367_s10 = scalar_lea.vmem %s1631_s24, 256  ;;  %s1458_s11 = smov [#allocation4]  }
  0x54   : > { %p1368_p12 = scmp.ne.s32.totalorder %s1631_s24, %s1367_s10  ;;  %s1372_s25 = sshll.u32 %s1458_s11, 4  ;;  %s1373_s25 = int_to_ptr.vmem [resolvable:$false] %s1372_s25 }
  0x55   : > { %s1374_s7 = scalar_lea.vmem %s1373_s25, 512  ;;  %p1375_p4 = scmp.lt.s32.totalorder %s1631_s24, %s1373_s25 }
  0x56   : > { %p1370_p2 = pnand %p1368_p12, %p1354_p0  ;;  %p1376_p13 = scmp.lt.s32.totalorder %s1374_s7, %s1367_s10 }
  0x58   : > { %p1371_p5 = pneg %p1370_p2  ;;  %p1377_p6 = por %p1376_p13, %p1375_p4 }
  0x5a   : > { %p1378_p10 = pnand %p1377_p6, %p1371_p5 }
  0x5c   : > { %1381 = shalt.err (!%p1378_p10)
}
  0x5d   : > { %1126 = dma.hbm_to_vmem [thread:$0]  (!%p1633_p11), %s1629_s17, 256, %s1631_s24, %s159_s27  }
  0x5e   : > { %179 = sbr.rel (%p1536_p8) target bundleno = 1553 (0x611), region = 32  ;;  %s1665_s8 = sand.u32 (!%p1536_p8), 1, %s1444_s13  }
  0x5f   : > { %s1081_s21 = sshll.u32 (!%p1536_p8), %s1665_s8, 4  ;;  %s182_s28 = scalar_lea.sflag (!%p1536_p8), [#allocation5], %s1665_s8 }
  0x60   : > { %s185_s22 = scalar_lea.vmem (!%p1536_p8), [#allocation4], %s1081_s21  ;;  %p1956_p4 = scmp.ne.s32.totalorder (!%p1536_p8), %s1949_s18, 0 }
  0x65   : > { %1427 = dma.done.wait (%p1956_p4), %s182_s28, 256  }
  0x66   : > { %1429 = vsyncadd (%p1956_p4), %s182_s28, 4294967040  ;;  %p1957_p5 = scmp.eq.s32.totalorder %s1517_s16, 0 }
  0x68   : > { %1431 = dma.done.wait (%p1957_p5), [#allocation8], 384   ;;  %p1958_p8 = pmov %p1957_p5 }
  0x69   : > { %v223_v0 = vlaneseq  ;;  %v1459_v1 = vmov 0.0   ;;  %vm221_vm0 = vcmask 277504   ;;  %v1680_v6 = vld [vmem:[%s185_s22] sm:$0xff]  ;;  %v1682_v8 = vld [vmem:[%s185_s22 + $0x8] sm:$0xff]  ;;  %s1460_s18 = smov 17   ;;  %s1461_s20 = smov 2  }
  0x6a   : > { %1433 = vsyncadd (%p1958_p8), [#allocation8], 4294966912  ;;  %219 = vst [vmem:[#allocation2] sm:$0xff] %v1459_v1  ;;  %v262_v9 = vmax.f32 %v1680_v6, 0.0  ;;  %v263_v14 = vmax.f32 %v1682_v8, 0.0  ;;  %s1462_s17 = smov 16  }
  0x6b   : > { %v224_v2 = vand.u32 127, %v223_v0  ;;  %222 = vst.msk [vmem:[#allocation2 + $0x10] sm:$0xff] %vm221_vm0, %v1459_v1  ;;  %s1463_s24 = smov 18   ;;  %s1464_s26 = smov 32   ;;  %vm275_vm5 = vcmask 1047688   ;;  %vm270_vm6 = vcmask 138240  }
  0x6c   : > { %266 = vrot.lane.b32.xlu0 %v262_v9, %s1460_s18  ;;  %s1465_s27 = smov 34   ;;  %s1466_s29 = smov 111   ;;  %vm313_vm7 = vcmask 15360   ;;  %vm346_vm8 = vcmask 130048   ;;  %vm396_vm9 = vcmask 146432   ;;  %vm427_vm10 = vcmask 261120  }
  0x6d   : > { %v225_v3 = vadd.s32 128, %v224_v2  ;;  %v230_v4 = vand.u32 15, %v224_v2  ;;  %s1467_s30 = smov 127   ;;  %s1468_s23 = smov 95   ;;  %v1473_v60 = vmov 0   ;;  %vm297_vm11 = vcmask 1039360  }
  0x6e   : > { %s1469_s5 = smov 112   ;;  %s1470_s10 = smov 126   ;;  %578 = vmatprep.mubr.bf16.mxu0 %v1473_v60  ;;  %631 = vmatprep.mubr.bf16.mxu1 %v1473_v60  ;;  %vm330_vm12 = vcmask 1031168   ;;  %vm363_vm13 = vcmask 916480   ;;  %vm382_vm14 = vcmask 908288   ;;  %vm413_vm15 = vcmask 900096  }
  0x6f   : > { %v237_v5 = vand.u32 15, %v225_v3  ;;  %vm250_vm1 = vcmp.ge.s32.totalorder %v230_v4, 1  ;;  %vm256_vm2 = vcmp.le.s32.totalorder %v230_v4, 14  ;;  %s1471_s11 = smov 110   ;;  %s1472_s25 = smov 96  }
  0x70   : > { %v1087_v7 = vsel %vm256_vm2, 1.0, %v1459_v1  ;;  %v1685_v10 = vsel %vm250_vm1, 1.0, %v1459_v1  ;;  %268 = vrot.lane.b32.xlu0 %v263_v14, %s1460_s18  ;;  %s1474_s7 = smov 94   ;;  %vm463_vm1 = vcmask 777216   ;;  %vm493_vm2 = vcmask 769024   ;;  %s1103_s28 = sshll.u32 %s1517_s16, 8 }
  0x71   : > { %vm251_vm3 = vcmp.ge.s32.totalorder %v237_v5, 1  ;;  %vm257_vm4 = vcmp.le.s32.totalorder %v237_v5, 14  ;;  %s215_s22 = scalar_lea.vmem [#allocation10], %s1081_s21  ;;  %s969_s16 = scalar_lea.sflag [#allocation6], %s1665_s8 }
  0x72   : > { %v1088_v11 = vsel %vm257_vm4, 1.0, %v1459_v1  ;;  %v1687_v12 = vsel %vm251_vm3, 1.0, %v1459_v1  ;;  %vm539_vm3 = vcmask 1043456   ;;  %vm535_vm4 = vcmask 588800   ;;  %p1959_p0 = scmp.ne.s32.totalorder %s1954_s6, 0 }
  0x73   : > { %v1189_v13 = vpack.i.bf16 %v1088_v11, %v1087_v7  ;;  %v1194_v15 = vpack.i.bf16 %v1687_v12, %v1685_v10 }
  0x75   : > { %1190 = vrot.lane.b32.xlu1 %v1189_v13, %s1461_s20  ;;  %1200 = vrot.lane.b32.xlu0 %v1189_v13, %s1463_s24  ;;  %s1898_s24 = scalar_lea.hbm %s1945_s3, %s1103_s28 }
  0x79   : > { %1195 = vrot.lane.b32.xlu1 %v1194_v15, %s1462_s17  ;;  %1210 = vrot.lane.b32.xlu0 %v1189_v13, %s1465_s27 }
  0x7d   : > { %1205 = vrot.lane.b32.xlu1 %v1194_v15, %s1464_s26  ;;  %s1475_s26 = smov [#allocation10]  }
  0x7e   : > { %s1386_s27 = sshll.u32 %s1475_s26, 4  ;;  %s1387_s27 = int_to_ptr.vmem [resolvable:$false] %s1386_s27 }
  0xde   : > { %v267_v16 = vpop.permute.xlu0 %266 }
  0xdf   : > { %276 = vst.msk [vmem:[#allocation2] sm:$0xff] %vm275_vm5, %v267_v16 }
  0xe2   : > { %v269_v18 = vpop.permute.xlu0 %268 }
  0xe3   : > { %278 = vst.msk [vmem:[#allocation2 + $0x10] sm:$0xff] %vm270_vm6, %v269_v18  ;;  %v1703_v21 = vsel %vm270_vm6, %v267_v16, %v269_v18 }
  0xe4   : > { %v282_v5 = vmul.f32 %v1687_v12, %v1703_v21 }
  0xe6   : > { %v1696_v19 = vld [vmem:[#allocation2] sm:$0xff] }
  0xe7   : > { %v1191_v17 = vpop.permute.xlu1 %1190  ;;  %376 = vrot.lane.b32.xlu1 %v1696_v19, %s1466_s29  ;;  %291 = vrot.lane.b32.xlu0 %v1696_v19, %s1467_s30  ;;  %v1201_v25 = vpop.permute.xlu0 %1200  ;;  %v281_v7 = vmul.f32 %v1685_v10, %v1696_v19 }
  0xe8   : > { %v1713_v26 = vunpack.i.h.bf16 %v1191_v17  ;;  %v1715_v27 = vunpack.i.l.bf16 %v1191_v17  ;;  %v1719_v29 = vunpack.i.l.bf16 %v1201_v25  ;;  %v1723_v31 = vunpack.i.h.bf16 %v1201_v25 }
  0xea   : > { %v1705_v22 = vld [vmem:[#allocation2 + $0x10] sm:$0xff]  ;;  %v1729_v33 = vsel %vm313_vm7, %v1715_v27, %v1713_v26  ;;  %v318_v35 = vmul.f32 %v1715_v27, %v1696_v19  ;;  %v401_v36 = vmul.f32 %v1719_v29, %v1696_v19  ;;  %v1746_v39 = vsel %vm396_vm9, %v1719_v29, %v1723_v31 }
  0xeb   : > { %v1196_v20 = vpop.permute.xlu1 %1195  ;;  %v1224_v24 = vpack.i.bf16 %v1705_v22, %v1703_v21  ;;  %v320_v37 = vmul.f32 %v1713_v26, %v1705_v22  ;;  %v1211_v42 = vpop.permute.xlu0 %1210  ;;  %v319_v43 = vmul.f32 %v1729_v33, %v1703_v21  ;;  %v402_v47 = vmul.f32 %v1746_v39, %v1703_v21 }
  0xec   : > { %v1707_v23 = vunpack.i.l.bf16 %v1196_v20  ;;  %v1717_v28 = vunpack.i.h.bf16 %v1196_v20  ;;  %v403_v48 = vmul.f32 %v1723_v31, %v1705_v22  ;;  %v1766_v50 = vunpack.i.h.bf16 %v1211_v42 }
  0xed   : > { %1225 = vrot.lane.b32.xlu0 %v1224_v24, %s1468_s23  ;;  %1215 = vrot.lane.b32.xlu1 %v1224_v24, %s1467_s30  ;;  %v1229_v45 = vpack.i.bf16 %v320_v37, %v319_v43  ;;  %v1768_v51 = vunpack.i.l.bf16 %v1211_v42 }
  0xee   : > { %v351_v30 = vmul.f32 %v1707_v23, %v1696_v19  ;;  %v1734_v34 = vsel %vm346_vm8, %v1707_v23, %v1717_v28  ;;  %v353_v38 = vmul.f32 %v1717_v28, %v1705_v22  ;;  %v1239_v53 = vpack.i.bf16 %v403_v48, %v402_v47 }
  0xef   : > { %v1206_v32 = vpop.permute.xlu1 %1205  ;;  %v352_v44 = vmul.f32 %v1734_v34, %v1703_v21  ;;  %v1781_v56 = vsel %vm221_vm0, %v1768_v51, %v1766_v50  ;;  %v481_v58 = vmul.f32 %v1768_v51, %v1696_v19  ;;  %v483_v62 = vmul.f32 %v1766_v50, %v1705_v22 }
  0xf0   : > { %v1748_v40 = vunpack.i.h.bf16 %v1206_v32  ;;  %v1750_v41 = vunpack.i.l.bf16 %v1206_v32  ;;  %v482_v59 = vmul.f32 %v1781_v56, %v1703_v21  ;;  %vm444_vm0 = vcmask 785408  }
  0xf1   : > { %357 = vrot.lane.b32.xlu0 %v351_v30, %s1469_s5  ;;  %1220 = vrot.lane.b32.xlu1 %v1224_v24, %s1466_s29  ;;  %v1234_v46 = vpack.i.bf16 %v353_v38, %v352_v44 }
  0xf2   : > { %v1764_v49 = vsel %vm427_vm10, %v1750_v41, %v1748_v40  ;;  %v432_v52 = vmul.f32 %v1750_v41, %v1696_v19  ;;  %v434_v55 = vmul.f32 %v1748_v40, %v1705_v22  ;;  %v1249_v61 = vpack.i.bf16 %v482_v59, %v481_v58 }
  0xf3   : > { %v433_v54 = vmul.f32 %v1764_v49, %v1703_v21 }
  0xf5   : > { %324 = vrot.lane.b32.xlu1 %v318_v35, %s1470_s10  ;;  %407 = vrot.lane.b32.xlu0 %v401_v36, %s1471_s11  ;;  %v1244_v57 = vpack.i.bf16 %v434_v55, %v433_v54 }
  0xf9   : > { %1230 = vrot.lane.b32.xlu1 %v1229_v45, %s1470_s10  ;;  %1235 = vrot.lane.b32.xlu0 %v1234_v46, %s1469_s5 }
  0xfd   : > { %438 = vrot.lane.b32.xlu1 %v432_v52, %s1472_s25  ;;  %1240 = vrot.lane.b32.xlu0 %v1239_v53, %s1471_s11 }
 0x101   : > { %1245 = vrot.lane.b32.xlu1 %v1244_v57, %s1472_s25  ;;  %457 = vrot.lane.b32.xlu0 %v1696_v19, %s1468_s23 }
 0x105   : > { %1250 = vrot.lane.b32.xlu1 %v1249_v61, %s1474_s7  ;;  %491 = vrot.lane.b32.xlu0 %v483_v62, %s1474_s7 }
 0x159   : > { %v377_v63 = vpop.permute.xlu1 %376  ;;  %v292_v0 = vpop.permute.xlu0 %291 }
 0x15f   : > { %v1216_v1 = vpop.permute.xlu1 %1215  ;;  %v1226_v2 = vpop.permute.xlu0 %1225 }
 0x160   : > { %v1218_v3 = vunpack.i.h.bf16 %v1216_v1  ;;  %v1217_v4 = vunpack.i.l.bf16 %v1216_v1  ;;  %v1228_v48 = vunpack.i.h.bf16 %v1226_v2  ;;  %v1227_v52 = vunpack.i.l.bf16 %v1226_v2 }
 0x162   : > { %v299_v9 = vsel %vm297_vm11, %v1217_v4, %v1218_v3  ;;  %v298_v11 = vsel %vm297_vm11, %v292_v0, %v1217_v4 }
 0x163   : > { %v1221_v13 = vpop.permute.xlu1 %1220  ;;  %v358_v14 = vpop.permute.xlu0 %357  ;;  %v521_v15 = vpack.c.bf16 %v299_v9, %v282_v5  ;;  %v520_v16 = vpack.c.bf16 %v298_v11, %v281_v7 }
 0x164   : > { %v1223_v30 = vunpack.i.h.bf16 %v1221_v13  ;;  %v1222_v32 = vunpack.i.l.bf16 %v1221_v13 }
 0x165   : > { %546 = vmatprep.subr.bf16.mxu0 %v521_v15 }
 0x166   : > { %547 = vmatpush1.bf16.msra.mxu0 %v520_v16  ;;  %v384_v53 = vsel %vm382_vm14, %v1222_v32, %v1223_v30  ;;  %v383_v55 = vsel %vm382_vm14, %v377_v63, %v1222_v32  ;;  %v465_v63 = vsel %vm463_vm1, %v1227_v52, %v1228_v48 }
 0x167   : > { %v325_v17 = vpop.permute.xlu1 %324  ;;  %v408_v18 = vpop.permute.xlu0 %407 }
 0x16b   : > { %v1231_v20 = vpop.permute.xlu1 %1230  ;;  %v1236_v22 = vpop.permute.xlu0 %1235 }
 0x16c   : > { %v1233_v21 = vunpack.i.h.bf16 %v1231_v20  ;;  %v1232_v24 = vunpack.i.l.bf16 %v1231_v20  ;;  %v1238_v25 = vunpack.i.h.bf16 %v1236_v22  ;;  %v1237_v19 = vunpack.i.l.bf16 %v1236_v22  ;;  %v1294_v22 = vld [vmem:[#allocation7] sm:$0xff]  }
 0x16e   : > { %v332_v35 = vsel %vm330_vm12, %v1232_v24, %v1233_v21  ;;  %v365_v36 = vsel %vm363_vm13, %v1237_v19, %v1238_v25  ;;  %v331_v37 = vsel %vm330_vm12, %v325_v17, %v1232_v24  ;;  %v364_v38 = vsel %vm363_vm13, %v358_v14, %v1237_v19 }
 0x16f   : > { %v439_v42 = vpop.permute.xlu1 %438  ;;  %v1241_v43 = vpop.permute.xlu0 %1240  ;;  %v523_v44 = vpack.c.bf16 %v365_v36, %v332_v35  ;;  %v522_v45 = vpack.c.bf16 %v364_v38, %v331_v37 }
 0x170   : > { %v1243_v46 = vunpack.i.h.bf16 %v1241_v43  ;;  %v1242_v47 = vunpack.i.l.bf16 %v1241_v43 }
 0x171   : > { %548 = vmatprep.subr.bf16.mxu0 %v523_v44 }
 0x172   : > { %549 = vmatpush1.bf16.msra.mxu0 %v522_v45  ;;  %v415_v54 = vsel %vm413_vm15, %v1242_v47, %v1243_v46  ;;  %v414_v57 = vsel %vm413_vm15, %v408_v18, %v1242_v47 }
 0x173   : > { %v1246_v58 = vpop.permute.xlu1 %1245  ;;  %v458_v59 = vpop.permute.xlu0 %457  ;;  %v525_v61 = vpack.c.bf16 %v415_v54, %v384_v53  ;;  %v524_v62 = vpack.c.bf16 %v414_v57, %v383_v55 }
 0x174   : > { %v1248_v0 = vunpack.i.h.bf16 %v1246_v58  ;;  %v1247_v1 = vunpack.i.l.bf16 %v1246_v58  ;;  %v464_v3 = vsel %vm463_vm1, %v458_v59, %v1227_v52 }
 0x175   : > { %550 = vmatprep.subr.bf16.mxu0 %v525_v61 }
 0x176   : > { %v445_v2 = vsel %vm444_vm0, %v439_v42, %v1247_v1  ;;  %551 = vmatpush1.bf16.msra.mxu0 %v524_v62  ;;  %v446_v4 = vsel %vm444_vm0, %v1247_v1, %v1248_v0  ;;  %v593_v42 = vld [vmem:[#allocation9] sm:$0xf] }
 0x177   : > { %v526_v5 = vpack.c.bf16 %v464_v3, %v445_v2  ;;  %v1251_v7 = vpop.permute.xlu1 %1250  ;;  %v527_v9 = vpack.c.bf16 %v465_v63, %v446_v4  ;;  %v492_v14 = vpop.permute.xlu0 %491 }
 0x178   : > { %v1253_v11 = vunpack.i.h.bf16 %v1251_v7  ;;  %v1252_v13 = vunpack.i.l.bf16 %v1251_v7 }
 0x179   : > { %552 = vmatprep.subr.bf16.mxu0 %v527_v9 }
 0x17a   : > { %v495_v15 = vsel %vm493_vm2, %v1253_v11, %v492_v14  ;;  %553 = vmatpush1.bf16.msra.mxu0 %v526_v5  ;;  %v494_v16 = vsel %vm493_vm2, %v1252_v13, %v1253_v11 }
 0x17b   : > { %v529_v17 = vpack.c.bf16 %v495_v15, %v495_v15  ;;  %v528_v18 = vpack.c.bf16 %v494_v16, %v494_v16 }
 0x17d   : > { %1090 = vmatprep.subr.msk.bf16.mxu0 %vm539_vm3, %v529_v17  ;;  %v541_v20 = vsel %vm539_vm3, %v528_v18, 0 }
 0x17e   : > { %555 = vmatpush1.bf16.msra.mxu0 %v541_v20 }
 0x181   : > { %1091 = vmatmul.mubr.msk.bf16.vlgmr.msra.gmra.mrb[0].mxu0 %vm535_vm4, %v1294_v22 }
 0x182   : > { %953 = vmatprep.mubr.bf16.mxu0 %v1473_v60 }
 0x254   : > { %v580_v21 = vpop.f32.mrb[0].mxu0 }
 0x255   : > { %v582_v24 = vpop.f32.mrb[1].mxu0  ;;  %v589_v19 = vmax.f32 %v580_v21, 0.0 }
 0x256   : > { %v584_v25 = vpop.f32.mrb[2].mxu0  ;;  %v590_v35 = vmax.f32 %v582_v24, 0.0 }
 0x257   : > { %v591_v30 = vmax.f32 %v584_v25, 0.0  ;;  %v586_v32 = vpop.f32.mrb[3].mxu0 }
 0x258   : > { %v592_v36 = vmax.f32 %v586_v32, 0.0 }
 0x259   : > { %v594_v37 = vpack.c.bf16 %v591_v30, %v589_v19 }
 0x25a   : > { %v595_v38 = vpack.c.bf16 %v592_v36, %v590_v35 }
 0x25c   : > { %599 = vmatprep.subr.bf16.mxu1 %v595_v38 }
 0x25d   : > { %600 = vmatpush1.bf16.msra.mxu1 %v594_v37 }
 0x260   : > { %1092 = vmatmul.mubr.msk.bf16.vlgmr.msra.gmra.mrb[0].mxu1 %vm346_vm8, %v593_v42 }
 0x261   : > { %899 = vmatprep.mubr.bf16.mxu1 %v1473_v60 }
 0x333   : > { %v633_v43 = vpop.f32.mrb[0].mxu1 }
 0x334   : > { %v1825_v44 = vadd.f32 %v633_v43, %v1680_v6  ;;  %v635_v45 = vpop.f32.mrb[1].mxu1 }
 0x335   : > { %v1828_v46 = vadd.f32 %v635_v45, %v1682_v8  ;;  %v637_v47 = vpop.f32.mrb[2].mxu1 }
 0x336   : > { %v642_v48 = vmax.f32 %v1825_v44, 0.0  ;;  %v638_v52 = vpop.f32.mrb[3].mxu1 }
 0x337   : > { %v643_v53 = vmax.f32 %v1828_v46, 0.0 }
 0x338   : > { %646 = vrot.lane.b32.xlu1 %v642_v48, %s1460_s18 }
 0x339   : > { %648 = vrot.lane.b32.xlu0 %v643_v53, %s1460_s18  ;;  %s983_s18 = sshll.u32 %s215_s22, 4  ;;  %s1900_s18 = int_to_ptr.vmem [resolvable:$true] %s983_s18 }
 0x33a   : > { %s1382_s21 = scalar_lea.vmem %s1900_s18, 256  ;;  %p1389_p7 = scmp.lt.s32.totalorder %s1900_s18, %s1387_s27 }
 0x33b   : > { %p1383_p11 = scmp.ne.s32.totalorder %s1900_s18, %s1382_s21 }
 0x33d   : > { %p1384_p1 = pnand %p1383_p11, %p1959_p0 }
 0x33f   : > { %p1385_p3 = pneg %p1384_p1 }
 0x3aa   : > { %v647_v54 = vpop.permute.xlu1 %646 }
 0x3ab   : > { %654 = vst.msk [vmem:[#allocation2] sm:$0xff] %vm275_vm5, %v647_v54  ;;  %v649_v60 = vpop.permute.xlu0 %648 }
 0x3ac   : > { %v650_v6 = vsel %vm270_vm6, %v647_v54, %v649_v60  ;;  %656 = vst.msk [vmem:[#allocation2 + $0x10] sm:$0xff] %vm270_vm6, %v649_v60 }
 0x3ad   : > { %v685_v1 = vmul.f32 %v650_v6, %v1729_v33  ;;  %v766_v33 = vmul.f32 %v650_v6, %v1764_v49  ;;  %v660_v13 = vmul.f32 %v1687_v12, %v650_v6 }
 0x3b2   : > { %v723_v8 = vld [vmem:[#allocation2] sm:$0xff] }
 0x3b3   : > { %729 = vrot.lane.b32.xlu1 %v723_v8, %s1466_s29  ;;  %669 = vrot.lane.b32.xlu0 %v723_v8, %s1467_s30  ;;  %v665_v55 = vld [vmem:[#allocation2 + $0x10] sm:$0xff]  ;;  %v705_v58 = vmul.f32 %v1707_v23, %v723_v8  ;;  %v744_v59 = vmul.f32 %v1719_v29, %v723_v8  ;;  %v684_v61 = vmul.f32 %v1715_v27, %v723_v8 }
 0x3b4   : > { %v1254_v57 = vpack.i.bf16 %v665_v55, %v650_v6  ;;  %v707_v62 = vmul.f32 %v1717_v28, %v665_v55  ;;  %v686_v0 = vmul.f32 %v1713_v26, %v665_v55  ;;  %v706_v23 = vmul.f32 %v650_v6, %v1734_v34 }
 0x3b5   : > { %v746_v27 = vmul.f32 %v1723_v31, %v665_v55  ;;  %v745_v28 = vmul.f32 %v650_v6, %v1746_v39  ;;  %v765_v26 = vmul.f32 %v1750_v41, %v723_v8  ;;  %v767_v4 = vmul.f32 %v1748_v40, %v665_v55 }
 0x3b6   : > { %v1274_v2 = vpack.i.bf16 %v707_v62, %v706_v23  ;;  %v1269_v29 = vpack.i.bf16 %v686_v0, %v685_v1  ;;  %v804_v31 = vmul.f32 %v1768_v51, %v723_v8  ;;  %v805_v39 = vmul.f32 %v650_v6, %v1781_v56 }
 0x3b7   : > { %711 = vrot.lane.b32.xlu0 %v705_v58, %s1469_s5  ;;  %1255 = vrot.lane.b32.xlu1 %v1254_v57, %s1467_s30  ;;  %v1279_v3 = vpack.i.bf16 %v746_v27, %v745_v28  ;;  %v1284_v34 = vpack.i.bf16 %v767_v4, %v766_v33  ;;  %v806_v63 = vmul.f32 %v1766_v50, %v665_v55 }
 0x3b8   : > { %v1289_v41 = vpack.i.bf16 %v805_v39, %v804_v31  ;;  %v659_v51 = vmul.f32 %v1685_v10, %v723_v8 }
 0x3bb   : > { %750 = vrot.lane.b32.xlu0 %v744_v59, %s1471_s11  ;;  %690 = vrot.lane.b32.xlu1 %v684_v61, %s1470_s10 }
 0x3bf   : > { %1265 = vrot.lane.b32.xlu0 %v1254_v57, %s1468_s23  ;;  %1260 = vrot.lane.b32.xlu1 %v1254_v57, %s1466_s29  ;;  %s1388_s29 = scalar_lea.vmem %s1387_s27, 512 }
 0x3c0   : > { %p1390_p9 = scmp.lt.s32.totalorder %s1388_s29, %s1382_s21 }
 0x3c2   : > { %p1391_p12 = por %p1390_p9, %p1389_p7 }
 0x3c3   : > { %1275 = vrot.lane.b32.xlu0 %v1274_v2, %s1469_s5  ;;  %1270 = vrot.lane.b32.xlu1 %v1269_v29, %s1470_s10 }
 0x3c4   : > { %p1392_p2 = pnand %p1391_p12, %p1385_p3 }
 0x3c7   : > { %1280 = vrot.lane.b32.xlu0 %v1279_v3, %s1471_s11  ;;  %771 = vrot.lane.b32.xlu1 %v765_v26, %s1472_s25 }
 0x3cb   : > { %789 = vrot.lane.b32.xlu0 %v723_v8, %s1468_s23  ;;  %1285 = vrot.lane.b32.xlu1 %v1284_v34, %s1472_s25 }
 0x3cf   : > { %814 = vrot.lane.b32.xlu0 %v806_v63, %s1474_s7  ;;  %1290 = vrot.lane.b32.xlu1 %v1289_v41, %s1474_s7  ;;  %v1295_v41 = vld [vmem:[#allocation7 + $0x8] sm:$0xff]  }
 0x425   : > { %v730_v40 = vpop.permute.xlu1 %729  ;;  %v670_v5 = vpop.permute.xlu0 %669 }
 0x429   : > { %v1256_v7 = vpop.permute.xlu1 %1255  ;;  %v712_v49 = vpop.permute.xlu0 %711 }
 0x42a   : > { %v1258_v9 = vunpack.i.h.bf16 %v1256_v7  ;;  %v1257_v11 = vunpack.i.l.bf16 %v1256_v7 }
 0x42c   : > { %v675_v14 = vsel %vm297_vm11, %v670_v5, %v1257_v11  ;;  %v676_v56 = vsel %vm297_vm11, %v1257_v11, %v1258_v9 }
 0x42d   : > { %v843_v50 = vpack.c.bf16 %v675_v14, %v659_v51  ;;  %v691_v15 = vpop.permute.xlu1 %690  ;;  %v751_v16 = vpop.permute.xlu0 %750  ;;  %v844_v17 = vpack.c.bf16 %v676_v56, %v660_v13 }
 0x42f   : > { %867 = vmatprep.subr.bf16.mxu1 %v844_v17 }
 0x430   : > { %868 = vmatpush1.bf16.msra.mxu1 %v843_v50  ;;  %v915_v50 = vld [vmem:[#allocation9 + $0x4] sm:$0xf] }
 0x431   : > { %v1261_v18 = vpop.permute.xlu1 %1260  ;;  %v1266_v20 = vpop.permute.xlu0 %1265 }
 0x432   : > { %v1263_v30 = vunpack.i.h.bf16 %v1261_v18  ;;  %v1262_v12 = vunpack.i.l.bf16 %v1261_v18  ;;  %v1268_v52 = vunpack.i.h.bf16 %v1266_v20  ;;  %v1267_v53 = vunpack.i.l.bf16 %v1266_v20 }
 0x434   : > { %v735_v54 = vsel %vm382_vm14, %v730_v40, %v1262_v12  ;;  %v736_v6 = vsel %vm382_vm14, %v1262_v12, %v1263_v30  ;;  %v796_v2 = vsel %vm463_vm1, %v1267_v53, %v1268_v52 }
 0x435   : > { %v1271_v22 = vpop.permute.xlu1 %1270  ;;  %v1276_v21 = vpop.permute.xlu0 %1275 }
 0x436   : > { %v1273_v24 = vunpack.i.h.bf16 %v1271_v22  ;;  %v1272_v25 = vunpack.i.l.bf16 %v1271_v22  ;;  %v1278_v19 = vunpack.i.h.bf16 %v1276_v21  ;;  %v1277_v10 = vunpack.i.l.bf16 %v1276_v21 }
 0x438   : > { %v696_v32 = vsel %vm330_vm12, %v691_v15, %v1272_v25  ;;  %v717_v35 = vsel %vm363_vm13, %v712_v49, %v1277_v10  ;;  %v697_v36 = vsel %vm330_vm12, %v1272_v25, %v1273_v24  ;;  %v718_v37 = vsel %vm363_vm13, %v1277_v10, %v1278_v19 }
 0x439   : > { %v845_v38 = vpack.c.bf16 %v717_v35, %v696_v32  ;;  %v772_v42 = vpop.permute.xlu1 %771  ;;  %v1281_v43 = vpop.permute.xlu0 %1280  ;;  %v846_v45 = vpack.c.bf16 %v718_v37, %v697_v36 }
 0x43a   : > { %v1283_v47 = vunpack.i.h.bf16 %v1281_v43  ;;  %v1282_v48 = vunpack.i.l.bf16 %v1281_v43 }
 0x43b   : > { %869 = vmatprep.subr.bf16.mxu1 %v846_v45 }
 0x43c   : > { %v756_v60 = vsel %vm413_vm15, %v751_v16, %v1282_v48  ;;  %870 = vmatpush1.bf16.msra.mxu1 %v845_v38  ;;  %v757_v8 = vsel %vm413_vm15, %v1282_v48, %v1283_v47 }
 0x43d   : > { %v847_v55 = vpack.c.bf16 %v756_v60, %v735_v54  ;;  %v1286_v57 = vpop.permute.xlu1 %1285  ;;  %v790_v58 = vpop.permute.xlu0 %789  ;;  %v848_v59 = vpack.c.bf16 %v757_v8, %v736_v6 }
 0x43e   : > { %v1288_v61 = vunpack.i.h.bf16 %v1286_v57  ;;  %v1287_v62 = vunpack.i.l.bf16 %v1286_v57  ;;  %v795_v23 = vsel %vm463_vm1, %v790_v58, %v1267_v53 }
 0x43f   : > { %871 = vmatprep.subr.bf16.mxu1 %v848_v59 }
 0x440   : > { %v777_v0 = vsel %vm444_vm0, %v772_v42, %v1287_v62  ;;  %872 = vmatpush1.bf16.msra.mxu1 %v847_v55  ;;  %v778_v1 = vsel %vm444_vm0, %v1287_v62, %v1288_v61 }
 0x441   : > { %v849_v29 = vpack.c.bf16 %v795_v23, %v777_v0  ;;  %v1291_v27 = vpop.permute.xlu1 %1290  ;;  %v850_v28 = vpack.c.bf16 %v796_v2, %v778_v1  ;;  %v815_v4 = vpop.permute.xlu0 %814 }
 0x442   : > { %v1293_v3 = vunpack.i.h.bf16 %v1291_v27  ;;  %v1292_v26 = vunpack.i.l.bf16 %v1291_v27 }
 0x443   : > { %873 = vmatprep.subr.bf16.mxu1 %v850_v28 }
 0x444   : > { %v816_v33 = vsel %vm493_vm2, %v1292_v26, %v1293_v3  ;;  %v817_v34 = vsel %vm493_vm2, %v1293_v3, %v815_v4  ;;  %874 = vmatpush1.bf16.msra.mxu1 %v849_v29 }
 0x445   : > { %v851_v31 = vpack.c.bf16 %v816_v33, %v816_v33  ;;  %v852_v39 = vpack.c.bf16 %v817_v34, %v817_v34 }
 0x447   : > { %1094 = vmatprep.subr.msk.bf16.mxu1 %vm539_vm3, %v852_v39  ;;  %v862_v63 = vsel %vm539_vm3, %v851_v31, 0 }
 0x448   : > { %876 = vmatpush1.bf16.msra.mxu1 %v862_v63 }
 0x44b   : > { %1095 = vmatmul.mubr.msk.bf16.vlgmr.msra.gmra.mrb[4].mxu1 %vm535_vm4, %v1295_v41 }
 0x51e   : > { %v901_v40 = vpop.f32.mrb[4].mxu1 }
 0x51f   : > { %v903_v5 = vpop.f32.mrb[5].mxu1  ;;  %v910_v49 = vmax.f32 %v901_v40, 0.0 }
 0x520   : > { %v905_v7 = vpop.f32.mrb[6].mxu1  ;;  %v911_v51 = vmax.f32 %v903_v5, 0.0 }
 0x521   : > { %v912_v9 = vmax.f32 %v905_v7, 0.0  ;;  %v907_v11 = vpop.f32.mrb[7].mxu1 }
 0x522   : > { %v913_v13 = vmax.f32 %v907_v11, 0.0 }
 0x523   : > { %v916_v14 = vpack.c.bf16 %v912_v9, %v910_v49 }
 0x524   : > { %v917_v56 = vpack.c.bf16 %v913_v13, %v911_v51 }
 0x526   : > { %921 = vmatprep.subr.bf16.mxu0 %v917_v56 }
 0x527   : > { %922 = vmatpush1.bf16.msra.mxu0 %v916_v14 }
 0x52a   : > { %1096 = vmatmul.mubr.msk.bf16.vlgmr.msra.gmra.mrb[4].mxu0 %vm346_vm8, %v915_v50 }
 0x5fd   : > { %v955_v15 = vpop.f32.mrb[4].mxu0 }
 0x5fe   : > { %v962_v16 = vadd.f32 %v955_v15, %v1825_v44  ;;  %v957_v17 = vpop.f32.mrb[5].mxu0 }
 0x5ff   : > { %v963_v18 = vadd.f32 %v957_v17, %v1828_v46  ;;  %v959_v20 = vpop.f32.mrb[6].mxu0 }
 0x600   : > { %v964_v22 = vmax.f32 %v962_v16, 0.0  ;;  %v960_v21 = vpop.f32.mrb[7].mxu0 }
 0x601   : > { %v965_v24 = vmax.f32 %v963_v18, 0.0 }
 0x602   : > { %966 = vst [vmem:[%s215_s22] sm:$0xff] %v964_v22 }
 0x603   : > { %967 = vst [vmem:[%s215_s22 + $0x8] sm:$0xff] %v965_v24 }
 0x604   : > { %1395 = shalt.err (!%p1392_p2)
}
 0x605   : > { %s1396_s8 = scalar_lea.hbm %s1898_s24, 256  ;;  %s1400_s5 = scalar_lea.hbm %s1945_s3, 512 }
 0x606   : > { %p1397_p13 = scmp.ne.s32.totalorder %s1898_s24, %s1396_s8  ;;  %p1401_p4 = scmp.lt.u32.totalorder %s1898_s24, %s1945_s3 }
 0x607   : > { %p1402_p5 = scmp.lt.u32.totalorder %s1400_s5, %s1396_s8  ;;  %p1404_p11 = scmp.lt.u32.totalorder %s1396_s8, %s1898_s24 }
 0x608   : > { %p1398_p6 = pnand %p1397_p13, %p1959_p0 }
 0x609   : > { %p1403_p8 = por %p1402_p5, %p1401_p4 }
 0x60a   : > { %p1399_p10 = pneg %p1398_p6 }
 0x60b   : > { %p1405_p1 = por %p1404_p11, %p1403_p8 }
 0x60d   : > { %p1406_p3 = pnand %p1405_p1, %p1399_p10 }
 0x60f   : > { %1409 = shalt.err (!%p1406_p3)
}
 0x610   : > { %1114 = dma.vmem_to_hbm [thread:$0]  (%p1959_p0), %s1900_s18, 256, %s1898_s24, %s969_s16  }
 0x611 PF: > { %s995_s25 = sand.u32 1, %s1440_s12   ;;  %p1960_p7 = scmp.ne.s32.totalorder %s1950_s19, 0 }
 0x612   : > { %p1961_p9 = scmp.ge.s32.totalorder %s1452_s15, 2  ;;  %s996_s7 = scalar_lea.sflag [#allocation6], %s995_s25 }
 0x614   : > { %p1128_p12 = pnand %p1961_p9, %p1960_p7 }
 0x616   : > { %1435 = dma.done.wait (!%p1128_p12), %s996_s7, 256  }
 0x617   : > { %1437 = vsyncadd (!%p1128_p12), %s996_s7, 4294967040  ;;  %p17_p2 = scmp.ge.s32.totalorder %s1606_s4, 4   ;;  %s1962_s12 = smov %s1444_s13 }
 0x618   : > { %s1963_s13 = smov %s1448_s14  ;;  %s1964_s14 = smov %s1622_s9 }
 0x619   : > { %s1965_s15 = smov %s1606_s4  ;;  %19 = sbr.rel (!%p17_p2) target bundleno = 6 (0x6), region = 87 }
 0x620   :  { %1001 = vsyncpa [#allocation5], 1 }
 0x621   :  { %1003 = vsyncpa [#allocation5 + $0x1], 1 }
 0x622   :  { %1004 = vsyncpa [#allocation8], 1 }
 0x623   :  { %1005 = vsyncpa [#allocation6], 1 }
 0x624   :  { %1007 = vsyncpa [#allocation6 + $0x1], 1 }

</bundles_post_ra>
